<compile_context>
chip_gen: v5e
topology: v5e:2x2
jax: 0.10.0
libtpu: 0.0.40
codegen_flags: <defaults>
</compile_context>

<pallas_src>
import functools
import math

import jax
import jax.numpy as jnp
from jax.experimental import pallas as pl
from jax.experimental.pallas import tpu as pltpu

REPS = 4       # self.reps in the PyTorch module
REP_PAD = 32   # rep axis of the segment constants, padded to a safe lane width


def _compute_groups(in_channels):
    r = math.sqrt(in_channels)
    if int(r) == r:
        g = in_channels / r
    else:
        g = in_channels / math.sqrt(in_channels / 2)
    assert int(g) == g, "number of groups in my_fc2 not appropriate"
    return int(g)


def _round_up(n, m):
    return ((n + m - 1) // m) * m


def _pick_tile(n_tok, tile_n):
    t = min(tile_n, _round_up(n_tok, 8))
    # v7x has two TensorCores; when a single tile would cover all tokens but
    # there is enough work to split, halve it so the "parallel" grid axis can
    # be sharded across both cores.
    if pl.cdiv(n_tok, t) < 2 and n_tok >= 512:
        t = _round_up(pl.cdiv(n_tok, 2), 8)
    return max(t, 8)


def _vmem_limit_bytes(tile_n, cin, cout_aug, out_c, reps, x_bytes):
    ro = reps * out_c
    # Streaming tiles (x in, out) are double buffered; constants (weight,
    # bias, segment matrices) counted double buffered too; generous headroom
    # for the full-width f32 temporaries (y, e, products, ...).
    stream = 2 * tile_n * (cin * x_bytes + out_c * 4)
    consts = 2 * (cin * cout_aug * x_bytes + cout_aug * 4
                  + 2 * ro * REP_PAD * 4 + 2 * ro * out_c * 4)
    temps = 8 * tile_n * cout_aug * 4
    need = stream + consts + temps
    # At least the default scoped limit, 2x headroom, capped below v7x's
    # 64 MiB physical VMEM.
    return int(min(max(32 << 20, 2 * need), 48 << 20))


def _myfc2_kernel(x_ref, w_ref, b_ref, seg_ones_ref, rep_ones_ref,
                  bcast_ref, seg_id_ref, o_ref, *, approx_recip):
    # x_ref        : (TN, Cin)              token tile (bf16 by default)
    # w_ref        : (Cin, (reps+2)*out)    [block-diag conv | "s" 0::reps | row-sum]
    # b_ref        : (1,   (reps+2)*out)    matching bias (f32)
    # seg_ones_ref : (reps*out, REP_PAD)    [c, r] = 1  iff  c // out == r
    # rep_ones_ref : (REP_PAD, reps*out)    transpose of seg_ones
    # bcast_ref    : (out, reps*out)        [o, c] = 1  iff  c %  out == o
    # seg_id_ref   : (reps*out, out)        transpose of bcast
    # o_ref        : (TN, out)              f32 output tile
    out_c = o_ref.shape[-1]
    reps = w_ref.shape[-1] // out_c - 2
    ro = reps * out_c

    # One fused MXU matmul: grouped 1x1 conv (block-diagonal dense weight)
    # plus both linear side paths ("s" and row_sum), f32 accumulation.
    y = jnp.dot(x_ref[...], w_ref[...],
                preferred_element_type=jnp.float32) + b_ref[...]

    logits = y[:, :ro]                 # (TN, reps*out)  channel c = r*out + o
    s_path = y[:, ro:ro + out_c]       # (TN, out)       conv channels 0::reps
    row_sum = y[:, ro + out_c:]        # (TN, out)       sum_r logits[:, r*out + o]

    # Full-width softmax pieces: one XLU max and one EUP exp over all reps*out
    # lanes.  The shift is shared across reps, which cancels inside each rep's
    # softmax (valid); a fully-underflowed rep is caught by the select below.
    m = jnp.max(logits, axis=-1, keepdims=True)
    e = jnp.exp(logits - m)

    # Per-rep segment sums on the otherwise idle MXU:
    #   denom[n, r] = sum_o e[n, r*out + o]
    #   num[n, r]   = sum_o e[n, r*out + o] * row_sum[n, o]
    rs_lanes = jnp.dot(row_sum, bcast_ref[...],
                       preferred_element_type=jnp.float32)            # (TN, ro)
    denom = jnp.dot(e, seg_ones_ref[...],
                    preferred_element_type=jnp.float32)               # (TN, REP_PAD)
    num = jnp.dot(e * rs_lanes, seg_ones_ref[...],
                  preferred_element_type=jnp.float32)                 # (TN, REP_PAD)

    # Padded rep columns (and any rep whose exps fully underflowed) get
    # denom = 1 while num = 0, so a = 0 instead of 0/0 = NaN.
    denom = jnp.where(denom > 0.0, denom, 1.0)

    # a[n, r] = sum_o softmax_o(logits[n, :, r]) * row_sum[n, o]
    #         = sum_{r2} attention_KTV[n, r, r2]        (cf. PyTorch module)
    a = num * pl.reciprocal(denom, approx=approx_recip)               # (TN, REP_PAD)

    # out_attn[n, o] = sum_r logits[n, r*out + o] * a[n, r]: broadcast a back
    # onto the reps*out lanes, then segment-reduce onto the out lanes — both
    # as constant-RHS MXU matmuls.
    a_lanes = jnp.dot(a, rep_ones_ref[...],
                      preferred_element_type=jnp.float32)             # (TN, ro)
    attn = jnp.dot(logits * a_lanes, seg_id_ref[...],
                   preferred_element_type=jnp.float32)                # (TN, out)

    # TODO(synk): the (TN, out) store is only 25% lane-dense for out = 32;
    # repack to a lane-dense slab only if profiling shows writeback binding.
    o_ref[...] = (s_path + attn).astype(o_ref.dtype)


def my_fc2_forward(input_tbc, w_conv, b_conv, in_channels, out_channels,
                   tile_n=1024, use_bf16=True, approx_recip=None):
    """input_tbc: (T, B, C_in).  Returns (T, B, out_channels) float32."""
    T, B, cin = input_tbc.shape
    assert cin == in_channels
    if approx_recip is None:
        approx_recip = use_bf16     # keep the exact divide on the strict-f32 path
    groups = _compute_groups(in_channels)
    cin_g = in_channels // groups
    cout_total = out_channels * REPS
    cout_g = cout_total // groups
    cout_aug = cout_total + 2 * out_channels
    ro = REPS * out_channels

    x_dtype = jnp.bfloat16 if use_bf16 else jnp.float32
    x_bytes = 2 if use_bf16 else 4

    # Fold the grouped 1x1 conv into a dense block-diagonal (Cin, out*reps)
    # weight.  TODO(synk): for large group counts iterate groups on a second
    # grid axis with per-group (cin_g, cout_g) tiles instead of densifying.
    w_dense = jnp.zeros((in_channels, cout_total), jnp.float32)
    for g in range(groups):
        blk = w_conv[g * cout_g:(g + 1) * cout_g, :]            # (cout_g, cin_g)
        w_dense = w_dense.at[g * cin_g:(g + 1) * cin_g,
                             g * cout_g:(g + 1) * cout_g].set(blk.T)
    # Quantize the conv weights once (bf16 path) so the folded row-sum columns
    # are built from the same values the logit columns see.
    w_dense_q = w_dense.astype(x_dtype).astype(jnp.float32)

    # Fuse both linear side paths into the single matmul:
    #   columns [0, reps*out)              : conv channels (c = r*out + o)
    #   columns [reps*out, reps*out + out) : "s" path, conv channels 0::reps
    #   columns [reps*out + out, ...)      : row_sum, sum_r of channel r*out+o
    w_rowsum = w_dense_q.reshape(in_channels, REPS, out_channels).sum(axis=1)
    b_rowsum = b_conv.reshape(REPS, out_channels).sum(axis=0)
    w_aug = jnp.concatenate([w_dense_q, w_dense_q[:, 0::REPS], w_rowsum],
                            axis=1).astype(x_dtype)
    b_aug = jnp.concatenate([b_conv, b_conv[0::REPS], b_rowsum]
                            )[None, :].astype(jnp.float32)

    # Constant 0/1 segment matrices (rep axis padded to REP_PAD lanes) that
    # move the per-rep reductions/broadcasts onto the MXU.
    col_rep = jnp.arange(ro) // out_channels          # column -> rep index
    col_out = jnp.arange(ro) % out_channels           # column -> out index
    seg_ones = (col_rep[:, None] == jnp.arange(REP_PAD)[None, :]
                ).astype(jnp.float32)                                  # (ro, REP_PAD)
    rep_ones = seg_ones.T                                              # (REP_PAD, ro)
    bcast = (jnp.arange(out_channels)[:, None] == col_out[None, :]
             ).astype(jnp.float32)                                     # (out, ro)
    seg_id = bcast.T                                                   # (ro, out)

    # No (B,T) transposes and no padding pass: the per-token math is order
    # invariant, so (T,B,Cin) is flattened in place.  Ragged tail tiles rely
    # on Pallas' masked edge handling (undefined rows of a partial tile never
    # touch valid rows and their stores are dropped).
    n_tok = T * B
    x_flat = input_tbc.reshape(n_tok, cin)
    if x_flat.dtype != x_dtype:
        x_flat = x_flat.astype(x_dtype)

    t = _pick_tile(n_tok, tile_n)
    grid = (pl.cdiv(n_tok, t),)
    const_map = lambda i: (0, 0)

    kernel = functools.partial(_myfc2_kernel, approx_recip=approx_recip)
    out_flat = pl.pallas_call(
        kernel,
        out_shape=jax.ShapeDtypeStruct((n_tok, out_channels), jnp.float32),
        grid_spec=pltpu.PrefetchScalarGridSpec(
            num_scalar_prefetch=0,
            grid=grid,
            in_specs=[
                pl.BlockSpec((t, cin), lambda i: (i, 0)),
                # Constant operands (index_map == (0, 0)); tiny at these dims.
                # pl.Buffered(1) single-buffering is the lever when channel
                # counts grow toward v7x's 64 MiB VMEM.
                pl.BlockSpec((cin, cout_aug), const_map),
                pl.BlockSpec((1, cout_aug), const_map),
                pl.BlockSpec((ro, REP_PAD), const_map),
                pl.BlockSpec((REP_PAD, ro), const_map),
                pl.BlockSpec((out_channels, ro), const_map),
                pl.BlockSpec((ro, out_channels), const_map),
            ],
            out_specs=pl.BlockSpec((t, out_channels), lambda i: (i, 0)),
        ),
        compiler_params=pltpu.CompilerParams(
            dimension_semantics=("parallel",),
            vmem_limit_bytes=_vmem_limit_bytes(
                t, cin, cout_aug, out_channels, REPS, x_bytes),
        ),
    )(x_flat, w_aug, b_aug, seg_ones, rep_ones, bcast, seg_id)

    return out_flat.reshape(T, B, out_channels)


def _ref_forward(input_tbc, w_conv, b_conv, in_channels, out_channels, groups):
    """Pure-JAX re-statement of the PyTorch forward, for verification."""
    T, B, _ = input_tbc.shape
    cin_g = in_channels // groups
    cout_total = out_channels * REPS
    cout_g = cout_total // groups
    xin = jnp.transpose(input_tbc, (1, 0, 2))                  # (B, T, Cin)
    ys = []
    for g in range(groups):
        xg = xin[..., g * cin_g:(g + 1) * cin_g]               # (B, T, cin_g)
        wg = w_conv[g * cout_g:(g + 1) * cout_g, :]            # (cout_g, cin_g)
        ys.append(jnp.einsum("btc,oc->bto", xg, wg))
    y = jnp.concatenate(ys, axis=-1) + b_conv                  # (B, T, out*reps)
    s = y[..., 0::REPS]                                        # (B, T, out)
    x3 = y.reshape(B, T, REPS, out_channels)
    x3 = jnp.swapaxes(x3, 2, 3)                                # (B, T, out, reps)
    x_ = x3.reshape(B * T, out_channels, REPS)
    x_soft = jax.nn.softmax(jnp.swapaxes(x_, 1, 2), axis=-1)   # (N, reps, out)
    x_soft = jnp.swapaxes(x_soft, 1, 2)                        # (N, out, reps)
    attention_ktv = jnp.einsum("nor,nos->nrs", x_soft, x_)     # (N, reps, reps)
    mix = jnp.einsum("nor,nrs->nos", x_, attention_ktv)        # (N, out, reps)
    out_attn = mix.reshape(B, T, out_channels, REPS).sum(-1)
    x_out = s + out_attn
    return jnp.swapaxes(x_out, 0, 1)                           # (T, B, out)


if __name__ == "__main__":
    T, B = 8, 2
    in_channels, out_channels = 16, 32          # copies = 2, groups = 4
    groups = _compute_groups(in_channels)
    cin_g = in_channels // groups
    cout_total = out_channels * REPS

    key = jax.random.PRNGKey(0)
    k_w, k_b, k_x = jax.random.split(key, 3)
    bound = 1.0 / math.sqrt(cin_g)              # deterministic conv-style init
    w_conv = jax.random.uniform(k_w, (cout_total, cin_g), jnp.float32, -bound, bound)
    b_conv = jax.random.uniform(k_b, (cout_total,), jnp.float32, -bound, bound)
    x_in = jax.random.normal(k_x, (T, B, in_channels), jnp.float32)

    ref_f32 = _ref_forward(x_in, w_conv, b_conv, in_channels, out_channels, groups)

    # Strict f32 path: guards the full-width softmax restructure (shared max,
    # MXU segment sums, row-sum fold, exact reciprocal) against the
    # PyTorch-equivalent reference at 1e-4.
    out_f32 = jax.block_until_ready(
        my_fc2_forward(x_in, w_conv, b_conv, in_channels, out_channels,
                       use_bf16=False))
    assert out_f32.shape == (T, B, out_channels), out_f32.shape
    assert jnp.allclose(out_f32, ref_f32, atol=1e-4, rtol=1e-4), "f32 mismatch"

    # Default fast path: bf16 MXU feed + approx reciprocal (f32 accumulation).
    # Checked against the reference fed the same bf16-quantized activations /
    # weights; 1e-2 covers bf16 quantization + the approx reciprocal.
    out_bf16 = jax.block_until_ready(
        my_fc2_forward(x_in, w_conv, b_conv, in_channels, out_channels))
    assert out_bf16.shape == (T, B, out_channels), out_bf16.shape
    x_q = x_in.astype(jnp.bfloat16).astype(jnp.float32)
    w_q = w_conv.astype(jnp.bfloat16).astype(jnp.float32)
    ref_bf16 = _ref_forward(x_q, w_q, b_conv, in_channels, out_channels, groups)
    assert jnp.allclose(out_bf16, ref_bf16, atol=1e-2, rtol=1e-2), "bf16 mismatch"

    print("KERNEL_OK")
</pallas_src>

<mosaic_0001>
module attributes {stable_mosaic.version = 11 : i64} {
  func.func @_myfc2_kernel(%arg0: i32, %arg1: memref<16x16xf32, #tpu.memory_space<vmem>>, %arg2: memref<16x192xf32, #tpu.memory_space<vmem>>, %arg3: memref<1x192xf32, #tpu.memory_space<vmem>>, %arg4: memref<128x32xf32, #tpu.memory_space<vmem>>, %arg5: memref<32x128xf32, #tpu.memory_space<vmem>>, %arg6: memref<32x128xf32, #tpu.memory_space<vmem>>, %arg7: memref<128x32xf32, #tpu.memory_space<vmem>>, %arg8: memref<16x32xf32, #tpu.memory_space<vmem>>) attributes {dimension_semantics = [#tpu.dimension_semantics<parallel>], iteration_bounds = array<i64: 1>, scalar_prefetch = 0 : i64, scratch_operands = 0 : i64, tpu.core_type = #tpu.core_type<tc>, window_params = [{transform_indices = @transform_0, window_bounds = array<i64: 16, 16>}, {pipeline_mode = #tpu.pipeline_mode<synchronous>, transform_indices = @transform_1, window_bounds = array<i64: 16, 192>}, {pipeline_mode = #tpu.pipeline_mode<synchronous>, transform_indices = @transform_2, window_bounds = array<i64: 1, 192>}, {pipeline_mode = #tpu.pipeline_mode<synchronous>, transform_indices = @transform_3, window_bounds = array<i64: 128, 32>}, {pipeline_mode = #tpu.pipeline_mode<synchronous>, transform_indices = @transform_4, window_bounds = array<i64: 32, 128>}, {pipeline_mode = #tpu.pipeline_mode<synchronous>, transform_indices = @transform_5, window_bounds = array<i64: 32, 128>}, {pipeline_mode = #tpu.pipeline_mode<synchronous>, transform_indices = @transform_6, window_bounds = array<i64: 128, 32>}, {transform_indices = @transform_7, window_bounds = array<i64: 16, 32>}]} {
    %c0 = arith.constant 0 : index
    %c0_0 = arith.constant 0 : index
    %0 = vector.load %arg1[%c0, %c0_0] : memref<16x16xf32, #tpu.memory_space<vmem>>, vector<16x16xf32>
    %c0_1 = arith.constant 0 : index
    %c0_2 = arith.constant 0 : index
    %1 = vector.load %arg2[%c0_1, %c0_2] : memref<16x192xf32, #tpu.memory_space<vmem>>, vector<16x192xf32>
    %cst = arith.constant dense<0.000000e+00> : vector<16x192xf32>
    %2 = tpu.matmul %0, %1, %cst {dimension_numbers = #tpu.dot_dimension_numbers<[1], [0], [0], [1], [0, 0, 1, 1], [], []>} : vector<16x16xf32>, vector<16x192xf32>, vector<16x192xf32> -> vector<16x192xf32>
    %c0_3 = arith.constant 0 : index
    %c0_4 = arith.constant 0 : index
    %3 = vector.load %arg3[%c0_3, %c0_4] : memref<1x192xf32, #tpu.memory_space<vmem>>, vector<1x192xf32>
    %4 = vector.broadcast %3 : vector<1x192xf32> to vector<16x192xf32>
    %5 = arith.addf %2, %4 : vector<16x192xf32>
    %6 = vector.extract_strided_slice %5 {offsets = [0, 0], sizes = [16, 128], strides = [1, 1]} : vector<16x192xf32> to vector<16x128xf32>
    %7 = vector.extract_strided_slice %5 {offsets = [0, 128], sizes = [16, 32], strides = [1, 1]} : vector<16x192xf32> to vector<16x32xf32>
    %8 = vector.extract_strided_slice %5 {offsets = [0, 160], sizes = [16, 32], strides = [1, 1]} : vector<16x192xf32> to vector<16x32xf32>
    %cst_5 = arith.constant dense<0xFF800000> : vector<16xf32>
    %9 = vector.multi_reduction <maximumf>, %6, %cst_5 [1] : vector<16x128xf32> to vector<16xf32>
    %10 = vector.shape_cast %9 : vector<16xf32> to vector<16x1xf32>
    %11 = vector.broadcast %10 : vector<16x1xf32> to vector<16x128xf32>
    %12 = arith.subf %6, %11 : vector<16x128xf32>
    %13 = math.exp %12 : vector<16x128xf32>
    %c0_6 = arith.constant 0 : index
    %c0_7 = arith.constant 0 : index
    %14 = vector.load %arg6[%c0_6, %c0_7] : memref<32x128xf32, #tpu.memory_space<vmem>>, vector<32x128xf32>
    %cst_8 = arith.constant dense<0.000000e+00> : vector<16x128xf32>
    %15 = tpu.matmul %8, %14, %cst_8 {dimension_numbers = #tpu.dot_dimension_numbers<[1], [0], [0], [1], [0, 0, 1, 1], [], []>} : vector<16x32xf32>, vector<32x128xf32>, vector<16x128xf32> -> vector<16x128xf32>
    %c0_9 = arith.constant 0 : index
    %c0_10 = arith.constant 0 : index
    %16 = vector.load %arg4[%c0_9, %c0_10] : memref<128x32xf32, #tpu.memory_space<vmem>>, vector<128x32xf32>
    %cst_11 = arith.constant dense<0.000000e+00> : vector<16x32xf32>
    %17 = tpu.matmul %13, %16, %cst_11 {dimension_numbers = #tpu.dot_dimension_numbers<[1], [0], [0], [1], [0, 0, 1, 1], [], []>} : vector<16x128xf32>, vector<128x32xf32>, vector<16x32xf32> -> vector<16x32xf32>
    %18 = arith.mulf %13, %15 : vector<16x128xf32>
    %c0_12 = arith.constant 0 : index
    %c0_13 = arith.constant 0 : index
    %19 = vector.load %arg4[%c0_12, %c0_13] : memref<128x32xf32, #tpu.memory_space<vmem>>, vector<128x32xf32>
    %cst_14 = arith.constant dense<0.000000e+00> : vector<16x32xf32>
    %20 = tpu.matmul %18, %19, %cst_14 {dimension_numbers = #tpu.dot_dimension_numbers<[1], [0], [0], [1], [0, 0, 1, 1], [], []>} : vector<16x128xf32>, vector<128x32xf32>, vector<16x32xf32> -> vector<16x32xf32>
    %cst_15 = arith.constant 0.000000e+00 : f32
    %21 = vector.broadcast %cst_15 : f32 to vector<16x32xf32>
    %22 = arith.cmpf ogt, %17, %21 : vector<16x32xf32>
    %cst_16 = arith.constant 1.000000e+00 : f32
    %23 = vector.broadcast %cst_16 : f32 to vector<16x32xf32>
    %24 = arith.select %22, %17, %23 : vector<16x32xi1>, vector<16x32xf32>
    %25 = tpu.reciprocal %24 : vector<16x32xf32> -> vector<16x32xf32>
    %26 = arith.mulf %20, %25 : vector<16x32xf32>
    %c0_17 = arith.constant 0 : index
    %c0_18 = arith.constant 0 : index
    %27 = vector.load %arg5[%c0_17, %c0_18] : memref<32x128xf32, #tpu.memory_space<vmem>>, vector<32x128xf32>
    %cst_19 = arith.constant dense<0.000000e+00> : vector<16x128xf32>
    %28 = tpu.matmul %26, %27, %cst_19 {dimension_numbers = #tpu.dot_dimension_numbers<[1], [0], [0], [1], [0, 0, 1, 1], [], []>} : vector<16x32xf32>, vector<32x128xf32>, vector<16x128xf32> -> vector<16x128xf32>
    %29 = arith.mulf %6, %28 : vector<16x128xf32>
    %c0_20 = arith.constant 0 : index
    %c0_21 = arith.constant 0 : index
    %30 = vector.load %arg7[%c0_20, %c0_21] : memref<128x32xf32, #tpu.memory_space<vmem>>, vector<128x32xf32>
    %cst_22 = arith.constant dense<0.000000e+00> : vector<16x32xf32>
    %31 = tpu.matmul %29, %30, %cst_22 {dimension_numbers = #tpu.dot_dimension_numbers<[1], [0], [0], [1], [0, 0, 1, 1], [], []>} : vector<16x128xf32>, vector<128x32xf32>, vector<16x32xf32> -> vector<16x32xf32>
    %32 = arith.addf %7, %31 : vector<16x32xf32>
    %c0_23 = arith.constant 0 : index
    %c0_24 = arith.constant 0 : index
    %33 = vector.load %arg8[%c0_23, %c0_24] : memref<16x32xf32, #tpu.memory_space<vmem>>, vector<16x32xf32>
    tpu.vector_store %arg8[%c0_23, %c0_24], %32 {strides = array<i32>} : memref<16x32xf32, #tpu.memory_space<vmem>>, vector<16x32xf32>,
    return
  }
  func.func @transform_0(%arg0: i32) -> (i32, i32) {
    %c0_i32 = arith.constant 0 : i32
    %c0_i32_0 = arith.constant 0 : i32
    return %arg0, %c0_i32 : i32, i32
  }
  func.func @transform_1(%arg0: i32) -> (i32, i32) {
    %c0_i32 = arith.constant 0 : i32
    %c0_i32_0 = arith.constant 0 : i32
    %c0_i32_1 = arith.constant 0 : i32
    return %c0_i32, %c0_i32_0 : i32, i32
  }
  func.func @transform_2(%arg0: i32) -> (i32, i32) {
    %c0_i32 = arith.constant 0 : i32
    %c0_i32_0 = arith.constant 0 : i32
    %c0_i32_1 = arith.constant 0 : i32
    return %c0_i32, %c0_i32_0 : i32, i32
  }
  func.func @transform_3(%arg0: i32) -> (i32, i32) {
    %c0_i32 = arith.constant 0 : i32
    %c0_i32_0 = arith.constant 0 : i32
    %c0_i32_1 = arith.constant 0 : i32
    return %c0_i32, %c0_i32_0 : i32, i32
  }
  func.func @transform_4(%arg0: i32) -> (i32, i32) {
    %c0_i32 = arith.constant 0 : i32
    %c0_i32_0 = arith.constant 0 : i32
    %c0_i32_1 = arith.constant 0 : i32
    return %c0_i32, %c0_i32_0 : i32, i32
  }
  func.func @transform_5(%arg0: i32) -> (i32, i32) {
    %c0_i32 = arith.constant 0 : i32
    %c0_i32_0 = arith.constant 0 : i32
    %c0_i32_1 = arith.constant 0 : i32
    return %c0_i32, %c0_i32_0 : i32, i32
  }
  func.func @transform_6(%arg0: i32) -> (i32, i32) {
    %c0_i32 = arith.constant 0 : i32
    %c0_i32_0 = arith.constant 0 : i32
    %c0_i32_1 = arith.constant 0 : i32
    return %c0_i32, %c0_i32_0 : i32, i32
  }
  func.func @transform_7(%arg0: i32) -> (i32, i32) {
    %c0_i32 = arith.constant 0 : i32
    %c0_i32_0 = arith.constant 0 : i32
    return %arg0, %c0_i32 : i32, i32
  }
}

</mosaic_0001>

<bundles_post_ra>
// kernel: tpu_custom_call.1
= control target key start
LH: loop header
LB: loop body
LE: loop exit
PB: predicated region body
PF: predicated region fallthrough
CT: control target
= control target key end

     0   :  { %vm39_vm0 = vcmask 130048   ;;  %s592_s0 = inlined_call_operand.vmem [shape: f32[16,16], index: 0, kind: input, shape index: {}]   ;;  %s593_s1 = inlined_call_operand.vmem [shape: f32[16,192], index: 1, kind: input, shape index: {}]   ;;  %s594_s2 = inlined_call_operand.vmem [shape: f32[1,192], index: 2, kind: input, shape index: {}]   ;;  %s595_s3 = inlined_call_operand.vmem [shape: f32[128,32], index: 3, kind: input, shape index: {}]   ;;  %s596_s4 = inlined_call_operand.vmem [shape: f32[32,128], index: 4, kind: input, shape index: {}]   ;;  %s597_s5 = inlined_call_operand.vmem [shape: f32[32,128], index: 5, kind: input, shape index: {}]   ;;  %s598_s6 = inlined_call_operand.vmem [shape: f32[128,32], index: 6, kind: input, shape index: {}]   ;;  %s599_s7 = inlined_call_operand.hbm [shape: f32[16,32], index: 7, kind: output, shape index: {}]  }
   0x1   :  { %v31_v0 = vld [vmem:[%s593_s1 + $0x10] sm:$0xff]  ;;  %v32_v1 = vld [vmem:[%s593_s1 + $0x18] sm:$0xff]  ;;  %v29_v2 = vld [vmem:[%s593_s1] sm:$0xff] }
   0x2   :  { %60 = vmatpush.msra.mxu0 %v31_v0  ;;  %83 = vmatpush.msra.mxu1 %v32_v1  ;;  %v30_v3 = vld [vmem:[%s593_s1 + $0x8] sm:$0xff]  ;;  %v27_v4 = vld [vmem:[%s592_s0] sm:$0xff] }
   0x3   :  { %12 = vsyncpa [#allocation3], 0  ;;  %v28_v5 = vld [vmem:[%s592_s0 + $0x8] sm:$0xff]  ;;  %v155_v6 = vld [vmem:[%s595_s3 + $0x78] sm:$0xff]  ;;  %s380_s16 = smov 96   ;;  %vm112_vm1 = vcmask 261120  }
   0x4   :  { %61 = vmatpush.msra.mxu0 %v29_v2  ;;  %84 = vmatpush.msra.mxu1 %v30_v3  ;;  %v154_v7 = vld [vmem:[%s595_s3 + $0x70] sm:$0xff]  ;;  %v105_v8 = vld [vmem:[%s597_s5 + $0x18] sm:$0xff]  ;;  %v153_v10 = vld [vmem:[%s595_s3 + $0x68] sm:$0xff]  ;;  %s381_s13 = smov [#allocation2]   ;;  %s382_s15 = smov 128  }
   0x5   :  { %334 = vmatmul.msk.f32.vlgmr.msra.gmra.mxu0 %vm39_vm0, %v27_v4  ;;  %336 = vmatmul.msk.f32.vlgmr.msra.gmra.mxu1 %vm39_vm0, %v27_v4  ;;  %v104_v9 = vld [vmem:[%s597_s5 + $0x10] sm:$0xff]  ;;  %v103_v11 = vld [vmem:[%s597_s5 + $0x8] sm:$0xff]  ;;  %v152_v12 = vld [vmem:[%s595_s3 + $0x60] sm:$0xff] }
   0x6   :  { %156 = vmatpush.msra.mxu3 %v155_v6  ;;  %129 = vmatpush.msrb.mxu1 %v105_v8  ;;  %v102_v13 = vld [vmem:[%s597_s5] sm:$0xff]  ;;  %v151_v14 = vld [vmem:[%s595_s3 + $0x58] sm:$0xff]  ;;  %v150_v15 = vld [vmem:[%s595_s3 + $0x50] sm:$0xff] }
   0x7   :  { %181 = vmatpush.msrb.mxu0 %v155_v6  ;;  %v149_v16 = vld [vmem:[%s595_s3 + $0x48] sm:$0xff]  ;;  %v148_v17 = vld [vmem:[%s595_s3 + $0x40] sm:$0xff]  ;;  %v147_v18 = vld [vmem:[%s595_s3 + $0x38] sm:$0xff] }
   0x8   :  { %157 = vmatpush.msra.mxu3 %v154_v7  ;;  %130 = vmatpush.msrb.mxu1 %v104_v9  ;;  %v33_v19 = vld [vmem:[%s594_s2] sm:$0x3]  ;;  %v146_v20 = vld [vmem:[%s595_s3 + $0x30] sm:$0xff]  ;;  %v145_v31 = vld [vmem:[%s595_s3 + $0x28] sm:$0xff] }
   0x9   :  { %182 = vmatpush.msrb.mxu0 %v154_v7  ;;  %v35_v21 = vperm.slane %v33_v19, 0  ;;  %v36_v22 = vperm.slane %v33_v19, 1  ;;  %v144_v32 = vld [vmem:[%s595_s3 + $0x20] sm:$0xff]  ;;  %v143_v33 = vld [vmem:[%s595_s3 + $0x18] sm:$0xff]  ;;  %v142_v34 = vld [vmem:[%s595_s3 + $0x10] sm:$0xff] }
   0xa   :  { %158 = vmatpush.msra.mxu3 %v153_v10  ;;  %131 = vmatpush.msrb.mxu1 %v103_v11  ;;  %v141_v35 = vld [vmem:[%s595_s3 + $0x8] sm:$0xff]  ;;  %v140_v36 = vld [vmem:[%s595_s3] sm:$0xff]  ;;  %v241_v50 = vld [vmem:[%s596_s4 + $0x18] sm:$0xff] }
   0xb   :  { %183 = vmatpush.msrb.mxu0 %v153_v10  ;;  %v240_v51 = vld [vmem:[%s596_s4 + $0x10] sm:$0xff]  ;;  %v239_v53 = vld [vmem:[%s596_s4 + $0x8] sm:$0xff]  ;;  %v238_v54 = vld [vmem:[%s596_s4] sm:$0xff]  ;;  %s320_s4 = sshll.u32 %s381_s13, 4  ;;  %s321_s4 = int_to_ptr.vmem [resolvable:$true] %s320_s4 }
   0xc   :  { %159 = vmatpush.msra.mxu3 %v152_v12  ;;  %132 = vmatpush.msrb.mxu1 %v102_v13  ;;  %v288_v60 = vld [vmem:[%s598_s6 + $0x78] sm:$0xff]  ;;  %v287_v61 = vld [vmem:[%s598_s6 + $0x70] sm:$0xff]  ;;  %v286_v63 = vld [vmem:[%s598_s6 + $0x68] sm:$0xff] }
   0xd   :  { %335 = vmatmul.msk.f32.gmra.mxu0 %vm39_vm0, %v28_v5  ;;  %337 = vmatmul.msk.f32.gmra.mxu1 %vm39_vm0, %v28_v5  ;;  %v285_v0 = vld [vmem:[%s598_s6 + $0x60] sm:$0xff]  ;;  %v284_v2 = vld [vmem:[%s598_s6 + $0x58] sm:$0xff]  ;;  %v283_v4 = vld [vmem:[%s598_s6 + $0x50] sm:$0xff] }
   0xe   :  { %184 = vmatpush.msrb.mxu0 %v152_v12  ;;  %160 = vmatpush.msra.mxu3 %v151_v14  ;;  %v282_v7 = vld [vmem:[%s598_s6 + $0x48] sm:$0xff]  ;;  %v281_v8 = vld [vmem:[%s598_s6 + $0x40] sm:$0xff]  ;;  %v280_v11 = vld [vmem:[%s598_s6 + $0x38] sm:$0xff] }
   0xf   :  { %260 = vmatpush.msra.mxu1 %v241_v50  ;;  %289 = vmatpush.msra.mxu2 %v288_v60  ;;  %v277_v19 = vld [vmem:[%s598_s6 + $0x20] sm:$0xff] }
  0x10   :  { %185 = vmatpush.msrb.mxu0 %v151_v14  ;;  %161 = vmatpush.msra.mxu3 %v150_v15  ;;  %v279_v14 = vld [vmem:[%s598_s6 + $0x30] sm:$0xff] }
  0x11   :  { %261 = vmatpush.msra.mxu1 %v240_v51  ;;  %290 = vmatpush.msra.mxu2 %v287_v61 }
  0x12   :  { %186 = vmatpush.msrb.mxu0 %v150_v15  ;;  %162 = vmatpush.msra.mxu3 %v149_v16 }
  0x13   :  { %262 = vmatpush.msra.mxu1 %v239_v53  ;;  %291 = vmatpush.msra.mxu2 %v286_v63 }
  0x14   :  { %187 = vmatpush.msrb.mxu0 %v149_v16  ;;  %163 = vmatpush.msra.mxu3 %v148_v17 }
  0x15   :  { %263 = vmatpush.msra.mxu1 %v238_v54  ;;  %292 = vmatpush.msra.mxu2 %v285_v0 }
  0x16   :  { %188 = vmatpush.msrb.mxu0 %v148_v17  ;;  %164 = vmatpush.msra.mxu3 %v147_v18  ;;  %v278_v17 = vld [vmem:[%s598_s6 + $0x28] sm:$0xff] }
  0x17   :  { %293 = vmatpush.msra.mxu2 %v284_v2 }
  0x18   :  { %189 = vmatpush.msrb.mxu0 %v147_v18  ;;  %165 = vmatpush.msra.mxu3 %v146_v20 }
  0x19   :  { %294 = vmatpush.msra.mxu2 %v283_v4 }
  0x1a   :  { %190 = vmatpush.msrb.mxu0 %v146_v20  ;;  %166 = vmatpush.msra.mxu3 %v145_v31 }
  0x1b   :  { %295 = vmatpush.msra.mxu2 %v282_v7 }
  0x1c   :  { %191 = vmatpush.msrb.mxu0 %v145_v31  ;;  %167 = vmatpush.msra.mxu3 %v144_v32  ;;  %v275_v31 = vld [vmem:[%s598_s6 + $0x10] sm:$0xff] }
  0x1d   :  { %296 = vmatpush.msra.mxu2 %v281_v8 }
  0x1e   :  { %192 = vmatpush.msrb.mxu0 %v144_v32  ;;  %168 = vmatpush.msra.mxu3 %v143_v33 }
  0x1f   :  { %297 = vmatpush.msra.mxu2 %v280_v11 }
  0x20   :  { %193 = vmatpush.msrb.mxu0 %v143_v33  ;;  %169 = vmatpush.msra.mxu3 %v142_v34 }
  0x21   :  { %298 = vmatpush.msra.mxu2 %v279_v14 }
  0x22   :  { %194 = vmatpush.msrb.mxu0 %v142_v34  ;;  %170 = vmatpush.msra.mxu3 %v141_v35 }
  0x23   :  { %299 = vmatpush.msra.mxu2 %v278_v17 }
  0x24   :  { %195 = vmatpush.msrb.mxu0 %v141_v35  ;;  %171 = vmatpush.msra.mxu3 %v140_v36 }
  0x25   :  { %300 = vmatpush.msra.mxu2 %v277_v19 }
  0x26   :  { %196 = vmatpush.msrb.mxu0 %v140_v36 }
  0x82   :  { %v63_v23 = vpop.f32.mrf.mxu0  ;;  %v86_v24 = vpop.f32.mrf.mxu1 }
  0x83   :  { %v487_v25 = vadd.f32 %v63_v23, %v35_v21  ;;  %v489_v26 = vadd.f32 %v86_v24, %v36_v22  ;;  %v276_v24 = vld [vmem:[%s598_s6 + $0x18] sm:$0xff] }
  0x84   :  { %301 = vmatpush.msra.mxu2 %v276_v24 }
  0x85   :  { %108 = vrot.lane.b32.xlu0 %v489_v26, %s380_s16  ;;  %92 = vmax.xlane.f32.xlu1 %v487_v25 }
  0x86   :  { %302 = vmatpush.msra.mxu2 %v275_v31 }
  0x8a   :  { %v66_v27 = vpop.f32.mrf.mxu0  ;;  %v89_v28 = vpop.f32.mrf.mxu1 }
  0x8b   :  { %v493_v29 = vadd.f32 %v66_v27, %v35_v21  ;;  %v495_v30 = vadd.f32 %v89_v28, %v36_v22 }
  0x8d   :  { %110 = vrot.lane.b32.xlu0 %v495_v30, %s380_s16  ;;  %94 = vmax.xlane.f32.xlu1 %v493_v29  ;;  %s383_s16 = smov 8  }
  0xf7   :  { %v109_v37 = vpop.permute.xlu0 %108 }
  0xf8   :  { %338 = vmatmul.msk.f32.vlgmr.msrb.gmra.mxu1 %vm112_vm1, %v109_v37  ;;  %v93_v38 = vpop.xlane.xlu1 %92  ;;  %v274_v37 = vld [vmem:[%s598_s6 + $0x8] sm:$0xff] }
  0xf9   :  { %v96_v39 = vsub.f32 %v487_v25, %v93_v38  ;;  %303 = vmatpush.msra.mxu2 %v274_v37  ;;  %v273_v38 = vld [vmem:[%s598_s6] sm:$0xff]  ;;  %s322_s6 = sshll.u32 %s599_s7, 4  ;;  %s323_s6 = int_to_ptr.hbm [resolvable:$true] %s322_s6 }
  0xfb   :  { %v98_v40 = vmul.f32 1.442695, %v96_v39  ;;  %304 = vmatpush.msra.mxu2 %v273_v38 }
  0xfd   :  { %346 = vpow2.f32 %v98_v40 }
  0xff   :  { %v111_v41 = vpop.permute.xlu0 %110 }
 0x100   :  { %339 = vmatmul.msk.f32.gmra.mxu1 %vm112_vm1, %v111_v41  ;;  %v95_v42 = vpop.xlane.xlu1 %94 }
 0x101   :  { %v97_v43 = vsub.f32 %v493_v29, %v95_v42 }
 0x103   :  { %v347_v44 = vpop.eup %346  ;;  %v100_v45 = vmul.f32 1.442695, %v97_v43 }
 0x104   :  { %172 = vmatmul.f32.vlgmr.msra.gmra.mxu3 %v347_v44 }
 0x105   :  { %348 = vpow2.f32 %v100_v45 }
 0x10b   :  { %v349_v46 = vpop.eup %348 }
 0x10c   :  { %175 = vmatmul.f32.gmra.mxu3 %v349_v46 }
 0x175   :  { %v134_v47 = vpop.f32.mrf.mxu1 }
 0x176   :  { %v179_v48 = vmul.f32 %v347_v44, %v134_v47 }
 0x178   :  { %197 = vmatmul.f32.vlgmr.msrb.gmra.mxu0 %v179_v48 }
 0x17d   :  { %v137_v49 = vpop.f32.mrf.mxu1 }
 0x17e   :  { %v180_v52 = vmul.f32 %v349_v46, %v137_v49 }
 0x180   :  { %200 = vmatmul.f32.gmra.mxu0 %v180_v52 }
 0x187   :  { %v173_v55 = vpop.f32.mrf.mxu3 }
 0x188   :  { %vm204_vm2 = vcmp.gt.f32.partialorder %v173_v55, 0.0 }
 0x189   :  { %v206_v56 = vsel %vm204_vm2, %v173_v55, 1.0 }
 0x18a   :  { %350 = vrcp.f32 %v206_v56  ;;  %v219_v12 = vand.u32 2147483648, %v206_v56  ;;  %vm213_vm5 = vweird.f32 %v206_v56  ;;  %v217_v13 = vand.u32 2147483647, %v206_v56 }
 0x18c   :  { %v220_v18 = vor.u32 1.1754944e-38, %v219_v12  ;;  %vm218_vm7 = vcmp.eq.f32.partialorder %v217_v13, 8.507059e+37 }
 0x18f   :  { %v176_v57 = vpop.f32.mrf.mxu3 }
 0x190   :  { %vm205_vm3 = vcmp.gt.f32.partialorder %v176_v57, 0.0  ;;  %v351_v59 = vpop.eup %350 }
 0x191   :  { %v207_v58 = vsel %vm205_vm3, %v176_v57, 1.0  ;;  %v209_v62 = vmul.f32 %v351_v59, %v206_v56  ;;  %vm214_vm4 = vweird.f32 %v351_v59 }
 0x192   :  { %352 = vrcp.f32 %v207_v58  ;;  %vm215_vm6 = vmor %vm213_vm5, %vm214_vm4  ;;  %v233_v27 = vand.u32 2147483648, %v207_v58  ;;  %vm227_vm9 = vweird.f32 %v207_v58  ;;  %v231_v28 = vand.u32 2147483647, %v207_v58 }
 0x193   :  { %v210_v1 = vsub.f32 1.0, %v209_v62 }
 0x194   :  { %v234_v33 = vor.u32 1.1754944e-38, %v233_v27  ;;  %vm232_vm11 = vcmp.eq.f32.partialorder %v231_v28, 8.507059e+37 }
 0x195   :  { %v211_v6 = vmul.f32 %v351_v59, %v210_v1 }
 0x197   :  { %v212_v10 = vadd.f32 %v351_v59, %v211_v6 }
 0x198   :  { %v353_v3 = vpop.eup %352 }
 0x199   :  { %v223_v5 = vmul.f32 %v353_v3, %v207_v58  ;;  %v216_v16 = vsel %vm215_vm6, %v351_v59, %v212_v10  ;;  %vm228_vm8 = vweird.f32 %v353_v3 }
 0x19a   :  { %v221_v21 = vsel %vm218_vm7, %v220_v18, %v216_v16  ;;  %vm229_vm10 = vmor %vm227_vm9, %vm228_vm8 }
 0x19b   :  { %v224_v9 = vsub.f32 1.0, %v223_v5 }
 0x19d   :  { %v225_v15 = vmul.f32 %v353_v3, %v224_v9 }
 0x19f   :  { %v226_v23 = vadd.f32 %v353_v3, %v225_v15 }
 0x1a1   :  { %v230_v32 = vsel %vm229_vm10, %v353_v3, %v226_v23 }
 0x1a2   :  { %v235_v35 = vsel %vm232_vm11, %v234_v33, %v230_v32 }
 0x1f5   :  { %v198_v20 = vpop.f32.mrf.mxu0 }
 0x1f6   :  { %v236_v22 = vmul.f32 %v221_v21, %v198_v20 }
 0x1f8   :  { %340 = vmatmul.msk.f32.vlgmr.msra.gmra.mxu1 %vm112_vm1, %v236_v22 }
 0x1fd   :  { %v201_v34 = vpop.f32.mrf.mxu0 }
 0x1fe   :  { %v237_v36 = vmul.f32 %v235_v35, %v201_v34 }
 0x200   :  { %341 = vmatmul.msk.f32.gmra.mxu1 %vm112_vm1, %v237_v36 }
 0x275   :  { %v265_v39 = vpop.f32.mrf.mxu1 }
 0x276   :  { %v271_v40 = vmul.f32 %v265_v39, %v487_v25 }
 0x278   :  { %305 = vmatmul.f32.vlgmr.msra.gmra.mxu2 %v271_v40 }
 0x27d   :  { %v268_v41 = vpop.f32.mrf.mxu1 }
 0x27e   :  { %v272_v42 = vmul.f32 %v268_v41, %v493_v29 }
 0x280   :  { %308 = vmatmul.f32.gmra.mxu2 %v272_v42 }
 0x2fb   :  { %v306_v43 = vpop.f32.mrf.mxu2 }
 0x2fc   :  { %v312_v44 = vadd.f32 %v306_v43, %v489_v26 }
 0x2fe   :  { %314 = vst.msk [vmem:[#allocation2] sm:$0xff] %vm112_vm1, %v312_v44 }
 0x303   :  { %v309_v45 = vpop.f32.mrf.mxu2 }
 0x304   :  { %v313_v25 = vadd.f32 %v309_v45, %v495_v30 }
 0x306   :  { %315 = vst.msk [vmem:[#allocation2 + $0x8] sm:$0xff] %vm112_vm1, %v313_v25 }
 0x307   :  { %328 = dma.vmem_to_hbm [thread:$0]  %s321_s4, 256, %s323_s6, [#allocation3], %s382_s15, %s382_s15, %s383_s16  }
 0x308   :  { %378 = dma.done.wait [#allocation3], 256  }
 0x309   :  { %379 = vsyncadd [#allocation3], 4294967040 }
 0x30a   :  { %333 = vsyncpa [#allocation3], 1 }

</bundles_post_ra>
